<compile_context>
chip_gen: v5e
topology: v5e:2x2
jax: 0.10.0
libtpu: 0.0.40
codegen_flags: <defaults>
</compile_context>

<pallas_src>
import functools

import jax
import jax.numpy as jnp
from jax.experimental import pallas as pl
from jax.experimental.pallas import tpu as pltpu

LEAKY_SLOPE = 0.01  # nn.LeakyReLU default negative_slope
LANE = 128
SUBLANE = 8


def _round_up(n, m):
    return ((n + m - 1) // m) * m


def _cdiv(a, b):
    return (a + b - 1) // b


def _leaky_relu(v):
    # valid for 0 < slope < 1: max(v, a*v) == leaky_relu(v)
    return jnp.maximum(v, LEAKY_SLOPE * v)


# --------------------------------------------------------------------------- #
# Kernel
# --------------------------------------------------------------------------- #
def _vae_mlp_kernel(
    # inputs
    x_ref, eps_ref,
    e_w1_ref, e_b1_ref, e_w2_ref, e_b2_ref,
    head_w_ref, head_b_ref,
    d_w1_ref, d_b1_ref, d_w2_ref, d_b2_ref,
    f_w_ref, f_b_ref,
    # outputs
    out_ref, head_ref,
):
    bf16 = jnp.bfloat16
    f32 = jnp.float32

    # input tile: (tm, 784) f32 -> bf16 for the MXU (K padded in vregs by Mosaic)
    x = x_ref[...].astype(bf16)

    # ---- encoder: two Linear + LeakyReLU blocks (bf16 MXU, f32 accumulate) ----
    h = _leaky_relu(
        jnp.dot(x, e_w1_ref[...], preferred_element_type=f32) + e_b1_ref[...]
    )
    h = _leaky_relu(
        jnp.dot(h.astype(bf16), e_w2_ref[...], preferred_element_type=f32)
        + e_b2_ref[...]
    )

    # ---- fused latent heads: one dot producing [mu | log_var] ----
    head = (
        jnp.dot(h.astype(bf16), head_w_ref[...], preferred_element_type=f32)
        + head_b_ref[...]
    )
    l_pad = head.shape[-1] // 2
    mu = head[:, :l_pad]
    log_var = head[:, l_pad:]

    # ---- reparameterization: z = eps * exp(0.5*logvar) + mu (f32, EUP exp) ----
    # TODO(synk): optional in-kernel eps via pltpu.prng_* would drop an input
    # stream but changes RNG semantics vs. torch.randn_like, so eps stays an arg.
    z = eps_ref[...] * jnp.exp(0.5 * log_var) + mu

    # ---- decoder: two Linear + LeakyReLU blocks ----
    d = _leaky_relu(
        jnp.dot(z.astype(bf16), d_w1_ref[...], preferred_element_type=f32)
        + d_b1_ref[...]
    )
    d = _leaky_relu(
        jnp.dot(d.astype(bf16), d_w2_ref[...], preferred_element_type=f32)
        + d_b2_ref[...]
    )

    # ---- final layer (is_mnist=True): Linear + Tanh, real 784-wide output ----
    out = jnp.tanh(
        jnp.dot(d.astype(bf16), f_w_ref[...], preferred_element_type=f32)
        + f_b_ref[...]
    )

    out_ref[...] = out.astype(out_ref.dtype)      # bf16 store, halves output bytes
    head_ref[...] = head.astype(head_ref.dtype)   # f32 [mu | log_var]


# --------------------------------------------------------------------------- #
# Parameter preparation (done ONCE, outside the per-step function)
# --------------------------------------------------------------------------- #
def _pad2(a, rows, cols, dtype):
    a = jnp.asarray(a, dtype)
    return jnp.pad(a, ((0, rows - a.shape[0]), (0, cols - a.shape[1])))


def prepare_padded_params(params):
    """Pad / fuse weights once. Weights bf16, biases f32, hidden dims lane-padded."""
    bf16, f32 = jnp.bfloat16, jnp.float32
    input_dim = params["e_w1"].shape[0]
    h1 = params["e_b1"].shape[-1]
    h2 = params["e_b2"].shape[-1]
    latent_dim = params["mu_b"].shape[-1]

    H1 = _round_up(h1, LANE)          # 100 -> 128
    H2 = _round_up(h2, LANE)          # 100 -> 128
    L = _round_up(latent_dim, LANE)   # 16  -> 128

    padded = {
        # encoder: real 784 K rows (no input-side lane padding needed)
        "e_w1": _pad2(params["e_w1"], input_dim, H1, bf16),
        "e_b1": _pad2(params["e_b1"], 1, H1, f32),
        "e_w2": _pad2(params["e_w2"], H1, H2, bf16),
        "e_b2": _pad2(params["e_b2"], 1, H2, f32),
        # decoder
        "d_w1": _pad2(params["d_w1"], L, H2, bf16),
        "d_b1": _pad2(params["d_b1"], 1, H2, f32),
        "d_w2": _pad2(params["d_w2"], H2, H1, bf16),
        "d_b2": _pad2(params["d_b2"], 1, H1, f32),
        # final layer: output stays at its real width (784)
        "f_w": _pad2(params["f_w"], H1, input_dim, bf16),
        "f_b": _pad2(params["f_b"], 1, input_dim, f32),
    }

    # fused latent head: [mu | log_var] -> one (H2, 2*L) matmul
    head_w = jnp.zeros((H2, 2 * L), bf16)
    head_w = head_w.at[:h2, :latent_dim].set(params["mu_w"].astype(bf16))
    head_w = head_w.at[:h2, L:L + latent_dim].set(params["var_w"].astype(bf16))
    head_b = jnp.zeros((1, 2 * L), f32)
    head_b = head_b.at[:, :latent_dim].set(params["mu_b"].astype(f32))
    head_b = head_b.at[:, L:L + latent_dim].set(params["var_b"].astype(f32))
    padded["head_w"] = head_w
    padded["head_b"] = head_b
    return padded


# --------------------------------------------------------------------------- #
# Batch tiling heuristic
# --------------------------------------------------------------------------- #
def _choose_batch_tile(B, max_tile):
    """Return (tm, B_pad). Tiny B -> single full block; else >=2 steps (v7x TCs),
    16-row granularity (bf16-output tile aligned), minimal over-padding."""
    max_tile = max(16, _round_up(max_tile, 16))
    rb8 = _round_up(B, SUBLANE)
    if rb8 <= 4 * SUBLANE:            # tiny batch: one grid step, block == padded batch
        return rb8, rb8
    rb16 = _round_up(B, 16)
    nsteps = max(2, _cdiv(rb16, max_tile))
    tm = min(max_tile, _round_up(_cdiv(rb16, nsteps), 16))
    return tm, tm * nsteps


# --------------------------------------------------------------------------- #
# Forward wrapper
# --------------------------------------------------------------------------- #
def vae_mlp_forward(x_nchw, eps, padded, latent_dim, *, max_batch_tile=512):
    """Fused VAE_MLP forward. Returns (output[bf16], input, mu, log_var)."""
    f32 = jnp.float32
    B = x_nchw.shape[0]

    input_dim = padded["e_w1"].shape[0]          # 784
    H1 = padded["e_w1"].shape[1]
    H2 = padded["e_w2"].shape[1]
    L2 = padded["head_w"].shape[1]               # 2 * L_pad
    L_pad = L2 // 2
    D_out = padded["f_w"].shape[1]               # 784 (real output width)

    tm, B_pad = _choose_batch_tile(B, max_batch_tile)
    grid = (B_pad // tm,)

    # activations: no lane padding, no dtype pre-pass (cast happens in-kernel)
    x_flat = x_nchw.reshape(B, -1).astype(f32)
    if B_pad != B:
        x_flat = jnp.pad(x_flat, ((0, B_pad - B), (0, 0)))
    eps_p = jnp.pad(jnp.asarray(eps, f32),
                    ((0, B_pad - B), (0, L_pad - eps.shape[-1])))

    # constant-index full-array blocks: weights DMA'd once, VMEM-resident
    def const_spec(arr):
        return pl.BlockSpec(arr.shape, lambda i: (0, 0))

    in_specs = [
        pl.BlockSpec((tm, input_dim), lambda i: (i, 0)),   # x (full last dim)
        pl.BlockSpec((tm, L_pad), lambda i: (i, 0)),       # eps
        const_spec(padded["e_w1"]), const_spec(padded["e_b1"]),
        const_spec(padded["e_w2"]), const_spec(padded["e_b2"]),
        const_spec(padded["head_w"]), const_spec(padded["head_b"]),
        const_spec(padded["d_w1"]), const_spec(padded["d_b1"]),
        const_spec(padded["d_w2"]), const_spec(padded["d_b2"]),
        const_spec(padded["f_w"]), const_spec(padded["f_b"]),
    ]
    out_specs = (
        pl.BlockSpec((tm, D_out), lambda i: (i, 0)),       # reconstruction (full last dim)
        pl.BlockSpec((tm, L2), lambda i: (i, 0)),          # fused [mu | log_var]
    )

    out_p, head_p = pl.pallas_call(
        _vae_mlp_kernel,
        out_shape=(
            jax.ShapeDtypeStruct((B_pad, D_out), jnp.bfloat16),
            jax.ShapeDtypeStruct((B_pad, L2), jnp.float32),
        ),
        grid=grid,
        in_specs=in_specs,
        out_specs=out_specs,
        compiler_params=pltpu.CompilerParams(
            dimension_semantics=("parallel",),
            vmem_limit_bytes=32 * 1024 * 1024,
        ),
    )(
        x_flat, eps_p,
        padded["e_w1"], padded["e_b1"], padded["e_w2"], padded["e_b2"],
        padded["head_w"], padded["head_b"],
        padded["d_w1"], padded["d_b1"], padded["d_w2"], padded["d_b2"],
        padded["f_w"], padded["f_b"],
    )

    # only the row de-pad remains (feature dims are already real-width)
    output = out_p[:B].reshape(-1, 1, 28, 28)       # is_mnist=True view
    mu = head_p[:B, :latent_dim]
    log_var = head_p[:B, L_pad:L_pad + latent_dim]
    return output, x_nchw, mu, log_var


# --------------------------------------------------------------------------- #
# Pure-JAX reference & init (for correctness check / demo)
# --------------------------------------------------------------------------- #
def _reference_forward(x_nchw, params, eps):
    x = x_nchw.reshape(x_nchw.shape[0], -1)
    h = jax.nn.leaky_relu(x @ params["e_w1"] + params["e_b1"], LEAKY_SLOPE)
    h = jax.nn.leaky_relu(h @ params["e_w2"] + params["e_b2"], LEAKY_SLOPE)
    mu = h @ params["mu_w"] + params["mu_b"]
    log_var = h @ params["var_w"] + params["var_b"]
    z = eps * jnp.exp(0.5 * log_var) + mu
    d = jax.nn.leaky_relu(z @ params["d_w1"] + params["d_b1"], LEAKY_SLOPE)
    d = jax.nn.leaky_relu(d @ params["d_w2"] + params["d_b2"], LEAKY_SLOPE)
    out = jnp.tanh(d @ params["f_w"] + params["f_b"])
    return out.reshape(-1, 1, 28, 28), mu, log_var


def init_params(key, input_dim=28 * 28, hidden_dims=(100, 100), latent_dim=16):
    """Deterministic init mirroring nn.Linear defaults; weights stored (in, out)."""
    h1, h2 = hidden_dims
    shapes = {
        "e_w1": (input_dim, h1), "e_b1": (1, h1),
        "e_w2": (h1, h2),        "e_b2": (1, h2),
        "mu_w": (h2, latent_dim), "mu_b": (1, latent_dim),
        "var_w": (h2, latent_dim), "var_b": (1, latent_dim),
        # decoder: hidden_dims reversed -> [h2, h1]
        "d_w1": (latent_dim, h2), "d_b1": (1, h2),
        "d_w2": (h2, h1),         "d_b2": (1, h1),
        "f_w": (h1, input_dim),   "f_b": (1, input_dim),
    }
    fan_in = {
        "e_w1": input_dim, "e_b1": input_dim,
        "e_w2": h1, "e_b2": h1,
        "mu_w": h2, "mu_b": h2, "var_w": h2, "var_b": h2,
        "d_w1": latent_dim, "d_b1": latent_dim,
        "d_w2": h2, "d_b2": h2,
        "f_w": h1, "f_b": h1,
    }
    params = {}
    keys = jax.random.split(key, len(shapes))
    for k, name in zip(keys, sorted(shapes)):
        bound = 1.0 / float(fan_in[name]) ** 0.5
        params[name] = jax.random.uniform(k, shapes[name], jnp.float32, -bound, bound)
    return params


if __name__ == "__main__":
    key = jax.random.PRNGKey(0)
    k_x, k_eps, k_p = jax.random.split(key, 3)

    B = 4
    latent_dim = 16
    input_dim = 28 * 28  # is_mnist=True forces 1x28x28 output view

    x = jax.random.normal(k_x, (B, 1, 28, 28), jnp.float32)
    eps = jax.random.normal(k_eps, (B, latent_dim), jnp.float32)  # torch.randn_like(std)
    params = init_params(k_p, input_dim=input_dim, latent_dim=latent_dim)

    # weights padded / fused ONCE, outside the per-step jitted function
    padded = prepare_padded_params(params)

    fwd = jax.jit(functools.partial(
        vae_mlp_forward, eps=eps, padded=padded, latent_dim=latent_dim))
    output, inp, mu, log_var = fwd(x)
    jax.block_until_ready((output, inp, mu, log_var))

    assert output.shape == (B, 1, 28, 28)
    assert inp.shape == (B, 1, 28, 28)
    assert mu.shape == (B, latent_dim)
    assert log_var.shape == (B, latent_dim)

    # numerical sanity vs. f32 reference (bf16 matmuls + bf16 output -> loose tol)
    ref_out, ref_mu, ref_lv = _reference_forward(x, params, eps)
    assert jnp.max(jnp.abs(output.astype(jnp.float32) - ref_out)) < 0.1
    assert jnp.max(jnp.abs(mu - ref_mu)) < 0.1
    assert jnp.max(jnp.abs(log_var - ref_lv)) < 0.1

    print("KERNEL_OK")
</pallas_src>

<mosaic_0001>
module attributes {stable_mosaic.version = 11 : i64} {
  func.func @_vae_mlp_kernel(%arg0: i32, %arg1: memref<8x784xf32, #tpu.memory_space<vmem>>, %arg2: memref<8x128xf32, #tpu.memory_space<vmem>>, %arg3: memref<784x128xbf16, #tpu.memory_space<vmem>>, %arg4: memref<1x128xf32, #tpu.memory_space<vmem>>, %arg5: memref<128x128xbf16, #tpu.memory_space<vmem>>, %arg6: memref<1x128xf32, #tpu.memory_space<vmem>>, %arg7: memref<128x256xbf16, #tpu.memory_space<vmem>>, %arg8: memref<1x256xf32, #tpu.memory_space<vmem>>, %arg9: memref<128x128xbf16, #tpu.memory_space<vmem>>, %arg10: memref<1x128xf32, #tpu.memory_space<vmem>>, %arg11: memref<128x128xbf16, #tpu.memory_space<vmem>>, %arg12: memref<1x128xf32, #tpu.memory_space<vmem>>, %arg13: memref<128x784xbf16, #tpu.memory_space<vmem>>, %arg14: memref<1x784xf32, #tpu.memory_space<vmem>>, %arg15: memref<8x784xbf16, #tpu.memory_space<vmem>>, %arg16: memref<8x256xf32, #tpu.memory_space<vmem>>) attributes {dimension_semantics = [#tpu.dimension_semantics<parallel>], iteration_bounds = array<i64: 1>, scalar_prefetch = 0 : i64, scratch_operands = 0 : i64, tpu.core_type = #tpu.core_type<tc>, window_params = [{transform_indices = @transform_0, window_bounds = array<i64: 8, 784>}, {transform_indices = @transform_1, window_bounds = array<i64: 8, 128>}, {pipeline_mode = #tpu.pipeline_mode<synchronous>, transform_indices = @transform_2, window_bounds = array<i64: 784, 128>}, {pipeline_mode = #tpu.pipeline_mode<synchronous>, transform_indices = @transform_3, window_bounds = array<i64: 1, 128>}, {pipeline_mode = #tpu.pipeline_mode<synchronous>, transform_indices = @transform_4, window_bounds = array<i64: 128, 128>}, {pipeline_mode = #tpu.pipeline_mode<synchronous>, transform_indices = @transform_5, window_bounds = array<i64: 1, 128>}, {pipeline_mode = #tpu.pipeline_mode<synchronous>, transform_indices = @transform_6, window_bounds = array<i64: 128, 256>}, {pipeline_mode = #tpu.pipeline_mode<synchronous>, transform_indices = @transform_7, window_bounds = array<i64: 1, 256>}, {pipeline_mode = #tpu.pipeline_mode<synchronous>, transform_indices = @transform_8, window_bounds = array<i64: 128, 128>}, {pipeline_mode = #tpu.pipeline_mode<synchronous>, transform_indices = @transform_9, window_bounds = array<i64: 1, 128>}, {pipeline_mode = #tpu.pipeline_mode<synchronous>, transform_indices = @transform_10, window_bounds = array<i64: 128, 128>}, {pipeline_mode = #tpu.pipeline_mode<synchronous>, transform_indices = @transform_11, window_bounds = array<i64: 1, 128>}, {pipeline_mode = #tpu.pipeline_mode<synchronous>, transform_indices = @transform_12, window_bounds = array<i64: 128, 784>}, {pipeline_mode = #tpu.pipeline_mode<synchronous>, transform_indices = @transform_13, window_bounds = array<i64: 1, 784>}, {transform_indices = @transform_14, window_bounds = array<i64: 8, 784>}, {transform_indices = @transform_15, window_bounds = array<i64: 8, 256>}]} {
    %c0 = arith.constant 0 : index
    %c0_0 = arith.constant 0 : index
    %0 = vector.load %arg1[%c0, %c0_0] : memref<8x784xf32, #tpu.memory_space<vmem>>, vector<8x784xf32>
    %1 = arith.truncf %0 : vector<8x784xf32> to vector<8x784xbf16>
    %c0_1 = arith.constant 0 : index
    %c0_2 = arith.constant 0 : index
    %2 = vector.load %arg3[%c0_1, %c0_2] : memref<784x128xbf16, #tpu.memory_space<vmem>>, vector<784x128xbf16>
    %cst = arith.constant dense<0.000000e+00> : vector<8x128xf32>
    %3 = tpu.matmul %1, %2, %cst {dimension_numbers = #tpu.dot_dimension_numbers<[1], [0], [0], [1], [0, 0, 1, 1], [], []>} : vector<8x784xbf16>, vector<784x128xbf16>, vector<8x128xf32> -> vector<8x128xf32>
    %c0_3 = arith.constant 0 : index
    %c0_4 = arith.constant 0 : index
    %4 = vector.load %arg4[%c0_3, %c0_4] : memref<1x128xf32, #tpu.memory_space<vmem>>, vector<1x128xf32>
    %5 = vector.broadcast %4 : vector<1x128xf32> to vector<8x128xf32>
    %6 = arith.addf %3, %5 : vector<8x128xf32>
    %cst_5 = arith.constant 0.00999999977 : f32
    %7 = vector.broadcast %cst_5 : f32 to vector<8x128xf32>
    %8 = arith.mulf %7, %6 : vector<8x128xf32>
    %9 = arith.maximumf %6, %8 : vector<8x128xf32>
    %10 = arith.truncf %9 : vector<8x128xf32> to vector<8x128xbf16>
    %c0_6 = arith.constant 0 : index
    %c0_7 = arith.constant 0 : index
    %11 = vector.load %arg5[%c0_6, %c0_7] : memref<128x128xbf16, #tpu.memory_space<vmem>>, vector<128x128xbf16>
    %cst_8 = arith.constant dense<0.000000e+00> : vector<8x128xf32>
    %12 = tpu.matmul %10, %11, %cst_8 {dimension_numbers = #tpu.dot_dimension_numbers<[1], [0], [0], [1], [0, 0, 1, 1], [], []>} : vector<8x128xbf16>, vector<128x128xbf16>, vector<8x128xf32> -> vector<8x128xf32>
    %c0_9 = arith.constant 0 : index
    %c0_10 = arith.constant 0 : index
    %13 = vector.load %arg6[%c0_9, %c0_10] : memref<1x128xf32, #tpu.memory_space<vmem>>, vector<1x128xf32>
    %14 = vector.broadcast %13 : vector<1x128xf32> to vector<8x128xf32>
    %15 = arith.addf %12, %14 : vector<8x128xf32>
    %cst_11 = arith.constant 0.00999999977 : f32
    %16 = vector.broadcast %cst_11 : f32 to vector<8x128xf32>
    %17 = arith.mulf %16, %15 : vector<8x128xf32>
    %18 = arith.maximumf %15, %17 : vector<8x128xf32>
    %19 = arith.truncf %18 : vector<8x128xf32> to vector<8x128xbf16>
    %c0_12 = arith.constant 0 : index
    %c0_13 = arith.constant 0 : index
    %20 = vector.load %arg7[%c0_12, %c0_13] : memref<128x256xbf16, #tpu.memory_space<vmem>>, vector<128x256xbf16>
    %cst_14 = arith.constant dense<0.000000e+00> : vector<8x256xf32>
    %21 = tpu.matmul %19, %20, %cst_14 {dimension_numbers = #tpu.dot_dimension_numbers<[1], [0], [0], [1], [0, 0, 1, 1], [], []>} : vector<8x128xbf16>, vector<128x256xbf16>, vector<8x256xf32> -> vector<8x256xf32>
    %c0_15 = arith.constant 0 : index
    %c0_16 = arith.constant 0 : index
    %22 = vector.load %arg8[%c0_15, %c0_16] : memref<1x256xf32, #tpu.memory_space<vmem>>, vector<1x256xf32>
    %23 = vector.broadcast %22 : vector<1x256xf32> to vector<8x256xf32>
    %24 = arith.addf %21, %23 : vector<8x256xf32>
    %25 = vector.extract_strided_slice %24 {offsets = [0, 0], sizes = [8, 128], strides = [1, 1]} : vector<8x256xf32> to vector<8x128xf32>
    %26 = vector.extract_strided_slice %24 {offsets = [0, 128], sizes = [8, 128], strides = [1, 1]} : vector<8x256xf32> to vector<8x128xf32>
    %c0_17 = arith.constant 0 : index
    %c0_18 = arith.constant 0 : index
    %27 = vector.load %arg2[%c0_17, %c0_18] : memref<8x128xf32, #tpu.memory_space<vmem>>, vector<8x128xf32>
    %cst_19 = arith.constant 5.000000e-01 : f32
    %28 = vector.broadcast %cst_19 : f32 to vector<8x128xf32>
    %29 = arith.mulf %28, %26 : vector<8x128xf32>
    %30 = math.exp %29 : vector<8x128xf32>
    %31 = arith.mulf %27, %30 : vector<8x128xf32>
    %32 = arith.addf %31, %25 : vector<8x128xf32>
    %33 = arith.truncf %32 : vector<8x128xf32> to vector<8x128xbf16>
    %c0_20 = arith.constant 0 : index
    %c0_21 = arith.constant 0 : index
    %34 = vector.load %arg9[%c0_20, %c0_21] : memref<128x128xbf16, #tpu.memory_space<vmem>>, vector<128x128xbf16>
    %cst_22 = arith.constant dense<0.000000e+00> : vector<8x128xf32>
    %35 = tpu.matmul %33, %34, %cst_22 {dimension_numbers = #tpu.dot_dimension_numbers<[1], [0], [0], [1], [0, 0, 1, 1], [], []>} : vector<8x128xbf16>, vector<128x128xbf16>, vector<8x128xf32> -> vector<8x128xf32>
    %c0_23 = arith.constant 0 : index
    %c0_24 = arith.constant 0 : index
    %36 = vector.load %arg10[%c0_23, %c0_24] : memref<1x128xf32, #tpu.memory_space<vmem>>, vector<1x128xf32>
    %37 = vector.broadcast %36 : vector<1x128xf32> to vector<8x128xf32>
    %38 = arith.addf %35, %37 : vector<8x128xf32>
    %cst_25 = arith.constant 0.00999999977 : f32
    %39 = vector.broadcast %cst_25 : f32 to vector<8x128xf32>
    %40 = arith.mulf %39, %38 : vector<8x128xf32>
    %41 = arith.maximumf %38, %40 : vector<8x128xf32>
    %42 = arith.truncf %41 : vector<8x128xf32> to vector<8x128xbf16>
    %c0_26 = arith.constant 0 : index
    %c0_27 = arith.constant 0 : index
    %43 = vector.load %arg11[%c0_26, %c0_27] : memref<128x128xbf16, #tpu.memory_space<vmem>>, vector<128x128xbf16>
    %cst_28 = arith.constant dense<0.000000e+00> : vector<8x128xf32>
    %44 = tpu.matmul %42, %43, %cst_28 {dimension_numbers = #tpu.dot_dimension_numbers<[1], [0], [0], [1], [0, 0, 1, 1], [], []>} : vector<8x128xbf16>, vector<128x128xbf16>, vector<8x128xf32> -> vector<8x128xf32>
    %c0_29 = arith.constant 0 : index
    %c0_30 = arith.constant 0 : index
    %45 = vector.load %arg12[%c0_29, %c0_30] : memref<1x128xf32, #tpu.memory_space<vmem>>, vector<1x128xf32>
    %46 = vector.broadcast %45 : vector<1x128xf32> to vector<8x128xf32>
    %47 = arith.addf %44, %46 : vector<8x128xf32>
    %cst_31 = arith.constant 0.00999999977 : f32
    %48 = vector.broadcast %cst_31 : f32 to vector<8x128xf32>
    %49 = arith.mulf %48, %47 : vector<8x128xf32>
    %50 = arith.maximumf %47, %49 : vector<8x128xf32>
    %51 = arith.truncf %50 : vector<8x128xf32> to vector<8x128xbf16>
    %c0_32 = arith.constant 0 : index
    %c0_33 = arith.constant 0 : index
    %52 = vector.load %arg13[%c0_32, %c0_33] : memref<128x784xbf16, #tpu.memory_space<vmem>>, vector<128x784xbf16>
    %cst_34 = arith.constant dense<0.000000e+00> : vector<8x784xf32>
    %53 = tpu.matmul %51, %52, %cst_34 {dimension_numbers = #tpu.dot_dimension_numbers<[1], [0], [0], [1], [0, 0, 1, 1], [], []>} : vector<8x128xbf16>, vector<128x784xbf16>, vector<8x784xf32> -> vector<8x784xf32>
    %c0_35 = arith.constant 0 : index
    %c0_36 = arith.constant 0 : index
    %54 = vector.load %arg14[%c0_35, %c0_36] : memref<1x784xf32, #tpu.memory_space<vmem>>, vector<1x784xf32>
    %55 = vector.broadcast %54 : vector<1x784xf32> to vector<8x784xf32>
    %56 = arith.addf %53, %55 : vector<8x784xf32>
    %57 = math.tanh %56 : vector<8x784xf32>
    %58 = arith.truncf %57 : vector<8x784xf32> to vector<8x784xbf16>
    %c0_37 = arith.constant 0 : index
    %c0_38 = arith.constant 0 : index
    %59 = vector.load %arg15[%c0_37, %c0_38] : memref<8x784xbf16, #tpu.memory_space<vmem>>, vector<8x784xbf16>
    tpu.vector_store %arg15[%c0_37, %c0_38], %58 {strides = array<i32>} : memref<8x784xbf16, #tpu.memory_space<vmem>>, vector<8x784xbf16>,
    %c0_39 = arith.constant 0 : index
    %c0_40 = arith.constant 0 : index
    %60 = vector.load %arg16[%c0_39, %c0_40] : memref<8x256xf32, #tpu.memory_space<vmem>>, vector<8x256xf32>
    tpu.vector_store %arg16[%c0_39, %c0_40], %24 {strides = array<i32>} : memref<8x256xf32, #tpu.memory_space<vmem>>, vector<8x256xf32>,
    return
  }
  func.func @transform_0(%arg0: i32) -> (i32, i32) {
    %c0_i32 = arith.constant 0 : i32
    %c0_i32_0 = arith.constant 0 : i32
    return %arg0, %c0_i32 : i32, i32
  }
  func.func @transform_1(%arg0: i32) -> (i32, i32) {
    %c0_i32 = arith.constant 0 : i32
    %c0_i32_0 = arith.constant 0 : i32
    return %arg0, %c0_i32 : i32, i32
  }
  func.func @transform_2(%arg0: i32) -> (i32, i32) {
    %c0_i32 = arith.constant 0 : i32
    %c0_i32_0 = arith.constant 0 : i32
    %c0_i32_1 = arith.constant 0 : i32
    return %c0_i32, %c0_i32_0 : i32, i32
  }
  func.func @transform_3(%arg0: i32) -> (i32, i32) {
    %c0_i32 = arith.constant 0 : i32
    %c0_i32_0 = arith.constant 0 : i32
    %c0_i32_1 = arith.constant 0 : i32
    return %c0_i32, %c0_i32_0 : i32, i32
  }
  func.func @transform_4(%arg0: i32) -> (i32, i32) {
    %c0_i32 = arith.constant 0 : i32
    %c0_i32_0 = arith.constant 0 : i32
    %c0_i32_1 = arith.constant 0 : i32
    return %c0_i32, %c0_i32_0 : i32, i32
  }
  func.func @transform_5(%arg0: i32) -> (i32, i32) {
    %c0_i32 = arith.constant 0 : i32
    %c0_i32_0 = arith.constant 0 : i32
    %c0_i32_1 = arith.constant 0 : i32
    return %c0_i32, %c0_i32_0 : i32, i32
  }
  func.func @transform_6(%arg0: i32) -> (i32, i32) {
    %c0_i32 = arith.constant 0 : i32
    %c0_i32_0 = arith.constant 0 : i32
    %c0_i32_1 = arith.constant 0 : i32
    return %c0_i32, %c0_i32_0 : i32, i32
  }
  func.func @transform_7(%arg0: i32) -> (i32, i32) {
    %c0_i32 = arith.constant 0 : i32
    %c0_i32_0 = arith.constant 0 : i32
    %c0_i32_1 = arith.constant 0 : i32
    return %c0_i32, %c0_i32_0 : i32, i32
  }
  func.func @transform_8(%arg0: i32) -> (i32, i32) {
    %c0_i32 = arith.constant 0 : i32
    %c0_i32_0 = arith.constant 0 : i32
    %c0_i32_1 = arith.constant 0 : i32
    return %c0_i32, %c0_i32_0 : i32, i32
  }
  func.func @transform_9(%arg0: i32) -> (i32, i32) {
    %c0_i32 = arith.constant 0 : i32
    %c0_i32_0 = arith.constant 0 : i32
    %c0_i32_1 = arith.constant 0 : i32
    return %c0_i32, %c0_i32_0 : i32, i32
  }
  func.func @transform_10(%arg0: i32) -> (i32, i32) {
    %c0_i32 = arith.constant 0 : i32
    %c0_i32_0 = arith.constant 0 : i32
    %c0_i32_1 = arith.constant 0 : i32
    return %c0_i32, %c0_i32_0 : i32, i32
  }
  func.func @transform_11(%arg0: i32) -> (i32, i32) {
    %c0_i32 = arith.constant 0 : i32
    %c0_i32_0 = arith.constant 0 : i32
    %c0_i32_1 = arith.constant 0 : i32
    return %c0_i32, %c0_i32_0 : i32, i32
  }
  func.func @transform_12(%arg0: i32) -> (i32, i32) {
    %c0_i32 = arith.constant 0 : i32
    %c0_i32_0 = arith.constant 0 : i32
    %c0_i32_1 = arith.constant 0 : i32
    return %c0_i32, %c0_i32_0 : i32, i32
  }
  func.func @transform_13(%arg0: i32) -> (i32, i32) {
    %c0_i32 = arith.constant 0 : i32
    %c0_i32_0 = arith.constant 0 : i32
    %c0_i32_1 = arith.constant 0 : i32
    return %c0_i32, %c0_i32_0 : i32, i32
  }
  func.func @transform_14(%arg0: i32) -> (i32, i32) {
    %c0_i32 = arith.constant 0 : i32
    %c0_i32_0 = arith.constant 0 : i32
    return %arg0, %c0_i32 : i32, i32
  }
  func.func @transform_15(%arg0: i32) -> (i32, i32) {
    %c0_i32 = arith.constant 0 : i32
    %c0_i32_0 = arith.constant 0 : i32
    return %arg0, %c0_i32 : i32, i32
  }
}

</mosaic_0001>

<bundles_post_ra>
// kernel: vae_mlp_forward.1
= control target key start
LH: loop header
LB: loop body
LE: loop exit
PB: predicated region body
PF: predicated region fallthrough
CT: control target
= control target key end

     0   :  { %21 = vsyncpa [#allocation3], 0  ;;  %s2904_s0 = inlined_call_operand.vmem [shape: f32[8,784], index: 0, kind: input, shape index: {}]   ;;  %s2905_s1 = inlined_call_operand.vmem [shape: f32[8,128], index: 1, kind: input, shape index: {}]   ;;  %s2906_s2 = inlined_call_operand.hbm [shape: bf16[784,128], index: 2, kind: input, shape index: {}]   ;;  %s2907_s3 = inlined_call_operand.vmem [shape: f32[1,128], index: 3, kind: input, shape index: {}]   ;;  %s2908_s4 = inlined_call_operand.hbm [shape: bf16[128,128], index: 4, kind: input, shape index: {}]   ;;  %s2909_s5 = inlined_call_operand.vmem [shape: f32[1,128], index: 5, kind: input, shape index: {}]   ;;  %s2910_s6 = inlined_call_operand.hbm [shape: bf16[128,256], index: 6, kind: input, shape index: {}]   ;;  %s2911_s7 = inlined_call_operand.vmem [shape: f32[1,256], index: 7, kind: input, shape index: {}]   ;;  %s2912_s8 = inlined_call_operand.hbm [shape: bf16[128,128], index: 8, kind: input, shape index: {}]   ;;  %s2913_s9 = inlined_call_operand.vmem [shape: f32[1,128], index: 9, kind: input, shape index: {}]   ;;  %s2914_s10 = inlined_call_operand.hbm [shape: bf16[128,128], index: 10, kind: input, shape index: {}]   ;;  %s2915_s11 = inlined_call_operand.vmem [shape: f32[1,128], index: 11, kind: input, shape index: {}]   ;;  %s2916_s12 = inlined_call_operand.vmem [shape: bf16[128,784], index: 12, kind: input, shape index: {}]   ;;  %s2917_s13 = inlined_call_operand.vmem [shape: f32[1,784], index: 13, kind: input, shape index: {}]   ;;  %s2918_s14 = inlined_call_operand.vmem [shape: bf16[8,784], index: 14, kind: output, shape index: {0}]   ;;  %s2919_s15 = inlined_call_operand.vmem [shape: f32[8,256], index: 15, kind: output, shape index: {1}]  }
   0x1   :  { %22 = vsyncpa [#allocation5], 0 }
   0x2   :  { %23 = vsyncpa [#allocation8], 0  ;;  %s47_s20 = sshll.u32 %s2908_s4, 4  ;;  %s2392_s21 = smov [#allocation4]   ;;  %s48_s20 = int_to_ptr.hbm [resolvable:$true] %s47_s20 }
   0x3   :  { %s49_s22 = sshll.u32 %s2392_s21, 4  ;;  %s77_s25 = sshll.u32 %s2912_s8, 4  ;;  %s50_s22 = int_to_ptr.vmem [resolvable:$true] %s49_s22  ;;  %s78_s25 = int_to_ptr.hbm [resolvable:$true] %s77_s25 }
   0x4   :  { %s2393_s26 = smov 64   ;;  %s2394_s27 = smov 4  }
   0x5   :  { %55 = dma.hbm_to_vmem [thread:$0]  %s48_s20, 1024, %s50_s22, [#allocation5], %s2393_s26, %s2393_s26, %s2394_s27  }
   0x6   :  { %s2395_s28 = smov [#allocation7]   ;;  %s32_s4 = sshll.u32 %s2906_s2, 4  ;;  %s33_s4 = int_to_ptr.hbm [resolvable:$true] %s32_s4 }
   0x7   :  { %s79_s29 = sshll.u32 %s2395_s28, 4  ;;  %s62_s18 = sshll.u32 %s2910_s6, 4  ;;  %s80_s29 = int_to_ptr.vmem [resolvable:$true] %s79_s29  ;;  %s63_s18 = int_to_ptr.hbm [resolvable:$true] %s62_s18 }
   0x8   :  { %85 = dma.hbm_to_vmem [thread:$0]  %s78_s25, 1024, %s80_s29, [#allocation8], %s2393_s26, %s2393_s26, %s2394_s27  }
   0x9   :  { %s2396_s19 = smov [#allocation2]   ;;  %s2397_s20 = smov [#allocation6]  }
   0xa   :  { %s34_s21 = sshll.u32 %s2396_s19, 4  ;;  %s64_s2 = sshll.u32 %s2397_s20, 4  ;;  %s35_s21 = int_to_ptr.vmem [resolvable:$true] %s34_s21  ;;  %s65_s2 = int_to_ptr.vmem [resolvable:$true] %s64_s2 }
   0xb   :  { %40 = dma.hbm_to_vmem [thread:$0]  %s33_s4, 6272, %s35_s21, [#allocation3], %s2393_s26, %s2393_s26, %s2394_s27  }
   0xc   :  { %s2398_s22 = smov 128   ;;  %s2399_s23 = smov 8  }
   0xd   :  { %70 = dma.hbm_to_vmem [thread:$0]  %s63_s18, 2048, %s65_s2, [#allocation5], %s2398_s22, %s2398_s22, %s2399_s23  }
   0xe   :  { %s92_s28 = sshll.u32 %s2914_s10, 4  ;;  %s2400_s6 = smov [#allocation9]   ;;  %s93_s28 = int_to_ptr.hbm [resolvable:$true] %s92_s28 }
   0xf   :  { %s94_s29 = sshll.u32 %s2400_s6, 4  ;;  %s95_s29 = int_to_ptr.vmem [resolvable:$true] %s94_s29 }
  0x10   :  { %100 = dma.hbm_to_vmem [thread:$0]  %s93_s28, 1024, %s95_s29, [#allocation8], %s2393_s26, %s2393_s26, %s2394_s27  }
  0x11   :  { %2386 = dma.done.wait [#allocation3], 6272  }
  0x12   :  { %2387 = vsyncadd [#allocation3], 4294961024 }
  0x13   :  { %2388 = dma.done.wait [#allocation5], 3072  }
  0x14   :  { %2389 = vsyncadd [#allocation5], 4294964224 }
  0x15   :  { %2390 = dma.done.wait [#allocation8], 2048  }
  0x16   :  { %2391 = vsyncadd [#allocation8], 4294965248  ;;  %v2099_v0 = vld [vmem:[#allocation2 + $0x38] sm:$0xff]  ;;  %v2098_v3 = vld [vmem:[#allocation2 + $0x30] sm:$0xff]  ;;  %vm538_vm0 = vcmask 130048   ;;  %vm1496_vm1 = vcmask 125952  }
  0x17   :  { %v2107_v1 = vld [vmem:[#allocation2 + $0x78] sm:$0xff]  ;;  %542 = vmatpush.bf16.msra.mxu0 %v2099_v0  ;;  %v2106_v4 = vld [vmem:[#allocation2 + $0x70] sm:$0xff]  ;;  %v2097_v8 = vld [vmem:[#allocation2 + $0x28] sm:$0xff] }
  0x18   :  { %v2115_v2 = vld [vmem:[#allocation2 + $0xb8] sm:$0xff]  ;;  %555 = vmatpush.bf16.msra.mxu1 %v2107_v1  ;;  %v2114_v5 = vld [vmem:[#allocation2 + $0xb0] sm:$0xff]  ;;  %v2105_v9 = vld [vmem:[#allocation2 + $0x68] sm:$0xff] }
  0x19   :  { %568 = vmatpush.bf16.msra.mxu2 %v2115_v2  ;;  %v2123_v6 = vld [vmem:[#allocation2 + $0xf8] sm:$0xff]  ;;  %v2122_v7 = vld [vmem:[#allocation2 + $0xf0] sm:$0xff]  ;;  %v2113_v10 = vld [vmem:[#allocation2 + $0xa8] sm:$0xff] }
  0x1a   :  { %581 = vmatpush.bf16.msra.mxu3 %v2123_v6  ;;  %v2121_v11 = vld [vmem:[#allocation2 + $0xe8] sm:$0xff]  ;;  %v2096_v12 = vld [vmem:[#allocation2 + $0x20] sm:$0xff]  ;;  %v2095_v16 = vld [vmem:[#allocation2 + $0x18] sm:$0xff] }
  0x1b   :  { %543 = vmatpush.bf16.msra.mxu0 %v2098_v3  ;;  %v2104_v13 = vld [vmem:[#allocation2 + $0x60] sm:$0xff]  ;;  %v2103_v17 = vld [vmem:[#allocation2 + $0x58] sm:$0xff]  ;;  %v2094_v20 = vld [vmem:[#allocation2 + $0x10] sm:$0xff] }
  0x1c   :  { %556 = vmatpush.bf16.msra.mxu1 %v2106_v4  ;;  %v2112_v14 = vld [vmem:[#allocation2 + $0xa0] sm:$0xff]  ;;  %v2111_v18 = vld [vmem:[#allocation2 + $0x98] sm:$0xff]  ;;  %v2102_v21 = vld [vmem:[#allocation2 + $0x50] sm:$0xff] }
  0x1d   :  { %569 = vmatpush.bf16.msra.mxu2 %v2114_v5  ;;  %v2120_v15 = vld [vmem:[#allocation2 + $0xe0] sm:$0xff]  ;;  %v2119_v19 = vld [vmem:[#allocation2 + $0xd8] sm:$0xff]  ;;  %v2110_v22 = vld [vmem:[#allocation2 + $0x90] sm:$0xff] }
  0x1e   :  { %582 = vmatpush.bf16.msra.mxu3 %v2122_v7  ;;  %v2118_v23 = vld [vmem:[#allocation2 + $0xd0] sm:$0xff]  ;;  %v2093_v24 = vld [vmem:[#allocation2 + $0x8] sm:$0xff]  ;;  %v2092_v27 = vld [vmem:[#allocation2] sm:$0xff] }
  0x1f   :  { %544 = vmatpush.bf16.msra.mxu0 %v2097_v8  ;;  %v2101_v25 = vld [vmem:[#allocation2 + $0x48] sm:$0xff]  ;;  %v2100_v29 = vld [vmem:[#allocation2 + $0x40] sm:$0xff]  ;;  %v2131_v32 = vld [vmem:[#allocation2 + $0x138] sm:$0xff] }
  0x20   :  { %557 = vmatpush.bf16.msra.mxu1 %v2105_v9  ;;  %v2109_v26 = vld [vmem:[#allocation2 + $0x88] sm:$0xff]  ;;  %v128_v30 = vld [vmem:[%s2904_s0] sm:$0xff]  ;;  %v2139_v33 = vld [vmem:[#allocation2 + $0x178] sm:$0xff] }
  0x21   :  { %570 = vmatpush.bf16.msra.mxu2 %v2113_v10  ;;  %v2117_v28 = vld [vmem:[#allocation2 + $0xc8] sm:$0xff]  ;;  %v2108_v34 = vld [vmem:[#allocation2 + $0x80] sm:$0xff]  ;;  %v130_v35 = vld [vmem:[%s2904_s0 + $0x10] sm:$0xff]  ;;  %v135_v36 = vpack.c.bf16 %v128_v30, %v128_v30 }
  0x22   :  { %583 = vmatpush.bf16.msra.mxu3 %v2121_v11  ;;  %v129_v31 = vld [vmem:[%s2904_s0 + $0x8] sm:$0xff]  ;;  %v2116_v38 = vld [vmem:[#allocation2 + $0xc0] sm:$0xff]  ;;  %v131_v40 = vld [vmem:[%s2904_s0 + $0x18] sm:$0xff]  ;;  %v137_v43 = vpack.c.bf16 %v130_v35, %v130_v35 }
  0x23   :  { %545 = vmatpush.bf16.msra.mxu0 %v2096_v12  ;;  %v136_v37 = vpack.c.bf16 %v129_v31, %v129_v31  ;;  %v2140_v39 = vld [vmem:[#allocation2 + $0x180] sm:$0xff]  ;;  %v2130_v41 = vld [vmem:[#allocation2 + $0x130] sm:$0xff]  ;;  %v138_v44 = vpack.c.bf16 %v131_v40, %v131_v40  ;;  %v2129_v45 = vld [vmem:[#allocation2 + $0x128] sm:$0xff] }
  0x24   :  { %558 = vmatpush.bf16.msra.mxu1 %v2104_v13  ;;  %v2138_v42 = vld [vmem:[#allocation2 + $0x170] sm:$0xff]  ;;  %v2137_v46 = vld [vmem:[#allocation2 + $0x168] sm:$0xff]  ;;  %v2128_v47 = vld [vmem:[#allocation2 + $0x120] sm:$0xff] }
  0x25   :  { %571 = vmatpush.bf16.msra.mxu2 %v2112_v14  ;;  %v2136_v48 = vld [vmem:[#allocation2 + $0x160] sm:$0xff]  ;;  %v2127_v49 = vld [vmem:[#allocation2 + $0x118] sm:$0xff]  ;;  %v134_v51 = vld [vmem:[%s2904_s0 + $0x30] sm:$0xff] }
  0x26   :  { %584 = vmatpush.bf16.msra.mxu3 %v2120_v15  ;;  %v2135_v50 = vld [vmem:[#allocation2 + $0x158] sm:$0xff]  ;;  %v2126_v52 = vld [vmem:[#allocation2 + $0x110] sm:$0xff]  ;;  %v141_v54 = vpack.c.bf16 %v134_v51, %v134_v51  ;;  %v2125_v55 = vld [vmem:[#allocation2 + $0x108] sm:$0xff] }
  0x27   :  { %546 = vmatpush.bf16.msra.mxu0 %v2095_v16  ;;  %v2134_v53 = vld [vmem:[#allocation2 + $0x150] sm:$0xff]  ;;  %v2133_v56 = vld [vmem:[#allocation2 + $0x148] sm:$0xff]  ;;  %v2124_v57 = vld [vmem:[#allocation2 + $0x100] sm:$0xff] }
  0x28   :  { %559 = vmatpush.bf16.msra.mxu1 %v2103_v17  ;;  %v2132_v58 = vld [vmem:[#allocation2 + $0x140] sm:$0xff]  ;;  %v133_v60 = vld [vmem:[%s2904_s0 + $0x28] sm:$0xff]  ;;  %v2147_v0 = vld [vmem:[#allocation4 + $0x30] sm:$0xff] }
  0x29   :  { %572 = vmatpush.bf16.msra.mxu2 %v2111_v18  ;;  %v132_v59 = vld [vmem:[%s2904_s0 + $0x20] sm:$0xff]  ;;  %v140_v62 = vpack.c.bf16 %v133_v60, %v133_v60  ;;  %v2146_v1 = vld [vmem:[#allocation4 + $0x28] sm:$0xff]  ;;  %v2145_v2 = vld [vmem:[#allocation4 + $0x20] sm:$0xff] }
  0x2a   :  { %585 = vmatpush.bf16.msra.mxu3 %v2119_v19  ;;  %v139_v61 = vpack.c.bf16 %v132_v59, %v132_v59  ;;  %v2148_v63 = vld [vmem:[#allocation4 + $0x38] sm:$0xff]  ;;  %v2143_v4 = vld [vmem:[#allocation4 + $0x10] sm:$0xff]  ;;  %v2142_v7 = vld [vmem:[#allocation4 + $0x8] sm:$0xff] }
  0x2b   :  { %547 = vmatpush.bf16.msra.mxu0 %v2094_v20  ;;  %v2144_v3 = vld [vmem:[#allocation4 + $0x18] sm:$0xff]  ;;  %v2141_v8 = vld [vmem:[#allocation4] sm:$0xff]  ;;  %v1798_v13 = vld [vmem:[#allocation6 + $0x70] sm:$0xf] }
  0x2c   :  { %560 = vmatpush.bf16.msra.mxu1 %v2102_v21  ;;  %v2164_v14 = vld [vmem:[#allocation6 + $0x74] sm:$0xf0]  ;;  %v2163_v15 = vld [vmem:[#allocation6 + $0x74] sm:$0xf]  ;;  %v1800_v17 = vld [vmem:[#allocation6 + $0x78] sm:$0xf0] }
  0x2d   :  { %573 = vmatpush.bf16.msra.mxu2 %v2110_v22  ;;  %v1799_v16 = vor.u32 %v2164_v14, %v1798_v13  ;;  %v1790_v18 = vld [vmem:[#allocation6 + $0x60] sm:$0xf]  ;;  %v2162_v19 = vld [vmem:[#allocation6 + $0x64] sm:$0xf0]  ;;  %v2246_v20 = vld [vmem:[%s2907_s3] ss:$0 sm:$0xff]  ;;  %v1803_v21 = vor.u32 %v2163_v15, %v1800_v17 }
  0x2e   :  { %586 = vmatpush.bf16.msra.mxu3 %v2118_v23  ;;  %v2161_v22 = vld [vmem:[#allocation6 + $0x64] sm:$0xf]  ;;  %v1792_v23 = vld [vmem:[#allocation6 + $0x68] sm:$0xf0]  ;;  %v1774_v35 = vld [vmem:[#allocation6 + $0x40] sm:$0xf] }
  0x2f   :  { %548 = vmatpush.bf16.msra.mxu0 %v2093_v24  ;;  %v1791_v24 = vor.u32 %v2162_v19, %v1790_v18  ;;  %v2154_v51 = vld [vmem:[#allocation6 + $0x24] sm:$0xf0]  ;;  %v1744_v14 = vld [vmem:[#allocation6 + $0x8] sm:$0xf0]  ;;  %v2171_v17 = vld [vmem:[#allocation7 + $0x30] sm:$0xff] }
  0x30   :  { %561 = vmatpush.bf16.msra.mxu1 %v2101_v25  ;;  %v1795_v25 = vor.u32 %v2161_v22, %v1792_v23  ;;  %v2170_v18 = vld [vmem:[#allocation7 + $0x28] sm:$0xff]  ;;  %v2247_v19 = vld [vmem:[%s2909_s5] ss:$0 sm:$0xff] }
  0x31   :  { %574 = vmatpush.bf16.msra.mxu2 %v2109_v26  ;;  %v1782_v26 = vld [vmem:[#allocation6 + $0x50] sm:$0xf] }
  0x32   :  { %587 = vmatpush.bf16.msra.mxu3 %v2117_v28  ;;  %v2159_v28 = vld [vmem:[#allocation6 + $0x54] sm:$0xf] }
  0x33   :  { %549 = vmatpush.bf16.msra.mxu0 %v2092_v27  ;;  %v2160_v27 = vld [vmem:[#allocation6 + $0x54] sm:$0xf0] }
  0x34   :  { %562 = vmatpush.bf16.msra.mxu1 %v2100_v29  ;;  %v1784_v29 = vld [vmem:[#allocation6 + $0x58] sm:$0xf0] }
  0x35   :  { %575 = vmatpush.bf16.msra.mxu2 %v2108_v34  ;;  %v1787_v34 = vor.u32 %v2159_v28, %v1784_v29  ;;  %v2167_v28 = vld [vmem:[#allocation7 + $0x10] sm:$0xff]  ;;  %v2166_v29 = vld [vmem:[#allocation7 + $0x8] sm:$0xff] }
  0x36   :  { %550 = vmatmul.bf16.vlgmr.msra.gmra.mxu0 %v135_v36  ;;  %588 = vmatpush.bf16.msra.mxu3 %v2116_v38  ;;  %v2158_v36 = vld [vmem:[#allocation6 + $0x44] sm:$0xf0]  ;;  %v1776_v38 = vld [vmem:[#allocation6 + $0x48] sm:$0xf0] }
  0x37   :  { %594 = vmatpush.bf16.msrb.mxu0 %v2131_v32  ;;  %563 = vmatmul.bf16.vlgmr.msra.gmra.mxu1 %v136_v37  ;;  %v1783_v32 = vor.u32 %v2160_v27, %v1782_v26  ;;  %v2157_v37 = vld [vmem:[#allocation6 + $0x44] sm:$0xf]  ;;  %v1775_v40 = vor.u32 %v2158_v36, %v1774_v35  ;;  %v2168_v27 = vld [vmem:[#allocation7 + $0x18] sm:$0xff] }
  0x38   :  { %607 = vmatpush.bf16.msrb.mxu1 %v2139_v33  ;;  %576 = vmatmul.bf16.vlgmr.msra.gmra.mxu2 %v137_v43  ;;  %v2156_v43 = vld [vmem:[#allocation6 + $0x34] sm:$0xf0]  ;;  %v2169_v26 = vld [vmem:[#allocation7 + $0x20] sm:$0xff] }
  0x39   :  { %627 = vmatpush.bf16.msrb.mxu2 %v2140_v39  ;;  %589 = vmatmul.bf16.vlgmr.msra.gmra.mxu3 %v138_v44  ;;  %v2155_v44 = vld [vmem:[#allocation6 + $0x34] sm:$0xf]  ;;  %v2177_v36 = vld [vmem:[#allocation9 + $0x20] sm:$0xff] }
  0x3a   :  { %704 = vmatpush.bf16.msrb.mxu3 %v2148_v63 }
  0x3b   :  { %595 = vmatpush.bf16.msrb.mxu0 %v2130_v41  ;;  %v1779_v41 = vor.u32 %v2157_v37, %v1776_v38 }
  0x3c   :  { %608 = vmatpush.bf16.msrb.mxu1 %v2138_v42  ;;  %v1766_v42 = vld [vmem:[#allocation6 + $0x30] sm:$0xf] }
  0x3d   :  { %822 = vmatpush.bf16.msra.mxu2 %v1799_v16  ;;  %v2172_v16 = vld [vmem:[#allocation7 + $0x38] sm:$0xff] }
  0x3e   :  { %705 = vmatpush.bf16.msrb.mxu3 %v2147_v0 }
  0x3f   :  { %596 = vmatpush.bf16.msrb.mxu0 %v2129_v45  ;;  %v1768_v45 = vld [vmem:[#allocation6 + $0x38] sm:$0xf0] }
  0x40   :  { %609 = vmatpush.bf16.msrb.mxu1 %v2137_v46 }
  0x41   :  { %823 = vmatpush.bf16.msra.mxu2 %v1791_v24 }
  0x42   :  { %706 = vmatpush.bf16.msrb.mxu3 %v2146_v1 }
  0x43   :  { %597 = vmatpush.bf16.msrb.mxu0 %v2128_v47 }
  0x44   :  { %610 = vmatpush.bf16.msrb.mxu1 %v2136_v48  ;;  %v1767_v48 = vor.u32 %v2156_v43, %v1766_v42 }
  0x45   :  { %824 = vmatpush.bf16.msra.mxu2 %v1783_v32  ;;  %v2179_v32 = vld [vmem:[#allocation9 + $0x30] sm:$0xff] }
  0x46   :  { %707 = vmatpush.bf16.msrb.mxu3 %v2145_v2 }
  0x47   :  { %598 = vmatpush.bf16.msrb.mxu0 %v2127_v49  ;;  %v1771_v49 = vor.u32 %v2155_v44, %v1768_v45  ;;  %v2175_v44 = vld [vmem:[#allocation9 + $0x10] sm:$0xff] }
  0x48   :  { %611 = vmatpush.bf16.msrb.mxu1 %v2135_v50  ;;  %1707 = vmatmul.msk.bf16.vlgmr.msrb.gmra.mxu2 %vm538_vm0, %v141_v54  ;;  %v1758_v50 = vld [vmem:[#allocation6 + $0x20] sm:$0xf] }
  0x49   :  { %825 = vmatpush.bf16.msra.mxu2 %v1775_v40 }
  0x4a   :  { %708 = vmatpush.bf16.msrb.mxu3 %v2144_v3 }
  0x4b   :  { %599 = vmatpush.bf16.msrb.mxu0 %v2126_v52  ;;  %v2153_v52 = vld [vmem:[#allocation6 + $0x24] sm:$0xf] }
  0x4c   :  { %612 = vmatpush.bf16.msrb.mxu1 %v2134_v53  ;;  %v1760_v53 = vld [vmem:[#allocation6 + $0x28] sm:$0xf0] }
  0x4d   :  { %826 = vmatpush.bf16.msra.mxu2 %v1767_v48  ;;  %v1763_v59 = vor.u32 %v2153_v52, %v1760_v53  ;;  %v2174_v53 = vld [vmem:[#allocation9 + $0x8] sm:$0xff] }
  0x4e   :  { %709 = vmatpush.bf16.msrb.mxu3 %v2143_v4  ;;  %v1750_v4 = vld [vmem:[#allocation6 + $0x10] sm:$0xf] }
  0x4f   :  { %600 = vmatpush.bf16.msrb.mxu0 %v2125_v55 }
  0x50   :  { %613 = vmatpush.bf16.msrb.mxu1 %v2133_v56 }
  0x52   :  { %710 = vmatpush.bf16.msrb.mxu3 %v2142_v7 }
  0x53   :  { %601 = vmatpush.bf16.msrb.mxu0 %v2124_v57  ;;  %v1759_v57 = vor.u32 %v2154_v51, %v1758_v50 }
  0x54   :  { %614 = vmatpush.bf16.msrb.mxu1 %v2132_v58 }
  0x55   :  { %827 = vmatpush.bf16.msra.mxu2 %v1759_v57  ;;  %v2230_v57 = vld [vmem:[%s2916_s12 + $0x18c] sm:$0xf] }
  0x56   :  { %602 = vmatmul.bf16.vlgmr.msrb.gmra.mxu0 %v139_v61  ;;  %711 = vmatpush.bf16.msrb.mxu3 %v2141_v8  ;;  %v1752_v8 = vld [vmem:[#allocation6 + $0x18] sm:$0xf0] }
  0x57   :  { %615 = vmatmul.bf16.vlgmr.msrb.gmra.mxu1 %v140_v62  ;;  %835 = vmatpush.bf16.msra.mxu0 %v1803_v21 }
  0x58   :  { %923 = vmatpush.bf16.msra.mxu1 %v2172_v16  ;;  %v1982_v16 = vld [vmem:[%s2916_s12 + $0xe0] sm:$0xf] }
  0x5b   :  { %836 = vmatpush.bf16.msra.mxu0 %v1795_v25 }
  0x5c   :  { %924 = vmatpush.bf16.msra.mxu1 %v2171_v17  ;;  %v2212_v17 = vld [vmem:[%s2916_s12 + $0xf8] sm:$0xf0] }
  0x5f   :  { %837 = vmatpush.bf16.msra.mxu0 %v1787_v34  ;;  %v2178_v34 = vld [vmem:[#allocation9 + $0x28] sm:$0xff] }
  0x60   :  { %925 = vmatpush.bf16.msra.mxu1 %v2170_v18 }
  0x63   :  { %838 = vmatpush.bf16.msra.mxu0 %v1779_v41 }
  0x64   :  { %926 = vmatpush.bf16.msra.mxu1 %v2169_v26 }
  0x67   :  { %839 = vmatpush.bf16.msra.mxu0 %v1771_v49 }
  0x68   :  { %927 = vmatpush.bf16.msra.mxu1 %v2168_v27  ;;  %v2224_v27 = vld [vmem:[%s2916_s12 + $0x15c] sm:$0xf] }
  0x6b   :  { %840 = vmatpush.bf16.msra.mxu0 %v1763_v59  ;;  %v2068_v59 = vld [vmem:[%s2916_s12 + $0x1a4] sm:$0xf0] }
  0x6c   :  { %928 = vmatpush.bf16.msra.mxu1 %v2167_v28  ;;  %v1983_v28 = vor.u32 %v2212_v17, %v1982_v16  ;;  %v2082_v16 = vld [vmem:[%s2916_s12 + $0x198] sm:$0xf] }
  0x70   :  { %929 = vmatpush.bf16.msra.mxu1 %v2166_v29  ;;  %v1954_v29 = vld [vmem:[%s2916_s12 + $0xa8] sm:$0xf] }
  0xb3   :  { %v551_v5 = vpop.f32.mrf.mxu0 }
  0xb4   :  { %v564_v6 = vpop.f32.mrf.mxu1  ;;  %v552_v30 = vadd.f32 %v2246_v20, %v551_v5  ;;  %v2152_v5 = vld [vmem:[#allocation6 + $0x14] sm:$0xf0] }
  0xb5   :  { %v1751_v7 = vor.u32 %v2152_v5, %v1750_v4  ;;  %v2040_v4 = vld [vmem:[%s2916_s12 + $0x16c] sm:$0xf0]  ;;  %v2046_v5 = vld [vmem:[%s2916_s12 + $0x158] sm:$0xf] }
  0xb6   :  { %v565_v39 = vadd.f32 %v564_v6, %v552_v30  ;;  %v2151_v6 = vld [vmem:[#allocation6 + $0x14] sm:$0xf]  ;;  %v2165_v30 = vld [vmem:[#allocation7] sm:$0xff] }
  0xb7   :  { %828 = vmatpush.bf16.msra.mxu2 %v1751_v7  ;;  %930 = vmatpush.bf16.msra.mxu1 %v2165_v30  ;;  %v2205_v30 = vld [vmem:[%s2916_s12 + $0xc0] sm:$0xf0] }
  0xbb   :  { %v553_v9 = vpop.f32.mrf.mxu0  ;;  %v577_v11 = vpop.f32.mrf.mxu2 }
  0xbc   :  { %v566_v10 = vpop.f32.mrf.mxu1  ;;  %v590_v12 = vpop.f32.mrf.mxu3  ;;  %v578_v46 = vadd.f32 %v577_v11, %v565_v39  ;;  %v1755_v9 = vor.u32 %v2151_v6, %v1752_v8  ;;  %v2150_v11 = vld [vmem:[#allocation6 + $0x4] sm:$0xf0]  ;;  %v2176_v39 = vld [vmem:[#allocation9 + $0x18] sm:$0xff]  ;;  %v2227_v6 = vld [vmem:[%s2916_s12 + $0x170] sm:$0xf0] }
  0xbd   :  { %v1742_v10 = vld [vmem:[#allocation6] sm:$0xf]  ;;  %v2047_v8 = vor.u32 %v2227_v6, %v2046_v5  ;;  %v2184_v5 = vld [vmem:[%s2916_s12 + $0x18] sm:$0xf0]  ;;  %v2181_v6 = vld [vmem:[%s2916_s12 + $0x4] sm:$0xf] }
  0xbe   :  { %v591_v54 = vadd.f32 %v590_v12, %v578_v46  ;;  %841 = vmatpush.bf16.msra.mxu0 %v1755_v9  ;;  %v2149_v12 = vld [vmem:[#allocation6 + $0x4] sm:$0xf]  ;;  %v1743_v13 = vor.u32 %v2150_v11, %v1742_v10  ;;  %v2010_v9 = vld [vmem:[%s2916_s12 + $0x118] sm:$0xf]  ;;  %v2219_v10 = vld [vmem:[%s2916_s12 + $0x130] sm:$0xf0] }
  0xbf   :  { %v1747_v15 = vor.u32 %v2149_v12, %v1744_v14  ;;  %v2216_v11 = vld [vmem:[%s2916_s12 + $0x11c] sm:$0xf]  ;;  %v2012_v12 = vld [vmem:[%s2916_s12 + $0x134] sm:$0xf0] }
  0xc0   :  { %829 = vmatpush.bf16.msra.mxu2 %v1743_v13  ;;  %v2018_v13 = vld [vmem:[%s2916_s12 + $0x120] sm:$0xf]  ;;  %v2220_v14 = vld [vmem:[%s2916_s12 + $0x138] sm:$0xf0]  ;;  %v2015_v18 = vor.u32 %v2216_v11, %v2012_v12 }
  0xc1   :  { %v1872_v11 = vld [vmem:[%s2916_s12 + $0x1c] sm:$0xf0]  ;;  %v2196_v12 = vld [vmem:[%s2916_s12 + $0x7c] sm:$0xf] }
  0xc2   :  { %842 = vmatpush.bf16.msra.mxu0 %v1747_v15  ;;  %v2011_v15 = vor.u32 %v2219_v10, %v2010_v9 }
  0xc3   :  { %v579_v31 = vpop.f32.mrf.mxu2 }
  0xc4   :  { %v592_v33 = vpop.f32.mrf.mxu3  ;;  %v2180_v31 = vld [vmem:[#allocation9 + $0x38] sm:$0xff] }
  0xc5   :  { %1007 = vmatpush.bf16.msra.mxu3 %v2180_v31  ;;  %v736_v33 = vld [vmem:[%s2911_s7] sm:$0x3]  ;;  %v2048_v31 = vld [vmem:[%s2916_s12 + $0x174] sm:$0xf0] }
  0xc6   :  { %v739_v35 = vperm.slane %v736_v33, 1  ;;  %v738_v41 = vperm.slane %v736_v33, 0 }
  0xc9   :  { %1008 = vmatpush.bf16.msra.mxu3 %v2179_v32 }
  0xcb   :  { %v629_v47 = vpop.f32.mrf.mxu2 }
  0xcd   :  { %1009 = vmatpush.bf16.msra.mxu3 %v2178_v34  ;;  %v2202_v34 = vld [vmem:[%s2916_s12 + $0xac] sm:$0xf] }
  0xd1   :  { %1010 = vmatpush.bf16.msra.mxu3 %v2177_v36  ;;  %v1962_v36 = vld [vmem:[%s2916_s12 + $0xb0] sm:$0xf] }
  0xd3   :  { %v603_v55 = vpop.f32.mrf.mxu0  ;;  %v631_v61 = vpop.f32.mrf.mxu2 }
  0xd4   :  { %v616_v56 = vpop.f32.mrf.mxu1  ;;  %v604_v58 = vadd.f32 %v603_v55, %v591_v54  ;;  %v2173_v54 = vld [vmem:[#allocation9] sm:$0xff] }
  0xd5   :  { %1011 = vmatpush.bf16.msra.mxu3 %v2176_v39  ;;  %v2066_v55 = vld [vmem:[%s2916_s12 + $0x188] sm:$0xf]  ;;  %v2234_v61 = vld [vmem:[%s2916_s12 + $0x1a8] sm:$0xf0]  ;;  %v2217_v39 = vld [vmem:[%s2916_s12 + $0x124] sm:$0xf] }
  0xd6   :  { %v617_v60 = vadd.f32 %v616_v56, %v604_v58  ;;  %v2233_v56 = vld [vmem:[%s2916_s12 + $0x1a0] sm:$0xf0] }
  0xd7   :  { %v2067_v58 = vor.u32 %v2233_v56, %v2066_v55  ;;  %v1898_v55 = vld [vmem:[%s2916_s12 + $0x38] sm:$0xf]  ;;  %v2191_v56 = vld [vmem:[%s2916_s12 + $0x50] sm:$0xf0] }
  0xd8   :  { %v630_v62 = vadd.f32 %v629_v47, %v617_v60  ;;  %v848_v47 = vld [vmem:[%s2905_s1] sm:$0xff]  ;;  %v2074_v60 = vld [vmem:[%s2916_s12 + $0x190] sm:$0xf] }
  0xd9   :  { %1012 = vmatpush.bf16.msra.mxu3 %v2175_v44  ;;  %1391 = vmatpush.bf16.msrb.mxu2 %v2067_v58 }
  0xda   :  { %v633_v63 = vmul.f32 0.01, %v630_v62 }
  0xdb   :  { %v605_v0 = vpop.f32.mrf.mxu0 }
  0xdc   :  { %v618_v1 = vpop.f32.mrf.mxu1  ;;  %v634_v2 = vmax.f32 %v630_v62, %v633_v63  ;;  %v2071_v62 = vor.u32 %v2230_v57, %v2068_v59  ;;  %v2075_v63 = vor.u32 %v2234_v61, %v2074_v60  ;;  %v2038_v0 = vld [vmem:[%s2916_s12 + $0x150] sm:$0xf]  ;;  %v2188_v60 = vld [vmem:[%s2916_s12 + $0x3c] sm:$0xf]  ;;  %v2203_v61 = vld [vmem:[%s2916_s12 + $0xb4] sm:$0xf] }
  0xdd   :  { %1013 = vmatpush.bf16.msra.mxu3 %v2174_v53  ;;  %v2226_v1 = vld [vmem:[%s2916_s12 + $0x168] sm:$0xf0]  ;;  %v2248_v53 = vld [vmem:[%s2913_s9] ss:$0 sm:$0xff] }
  0xde   :  { %v635_v3 = vpack.c.bf16 %v634_v2, %v634_v2  ;;  %v2223_v2 = vld [vmem:[%s2916_s12 + $0x154] sm:$0xf]  ;;  %1404 = vmatpush.bf16.msrb.mxu0 %v2071_v62  ;;  %1417 = vmatpush.bf16.msrb.mxu1 %v2075_v63  ;;  %v1964_v62 = vld [vmem:[%s2916_s12 + $0xcc] sm:$0xf0]  ;;  %v1900_v63 = vld [vmem:[%s2916_s12 + $0x54] sm:$0xf0] }
  0xdf   :  { %v2043_v7 = vor.u32 %v2223_v2, %v2040_v4  ;;  %v1870_v4 = vld [vmem:[%s2916_s12] sm:$0xf]  ;;  %v1903_v9 = vor.u32 %v2188_v60, %v1900_v63  ;;  %v2000_v60 = vld [vmem:[%s2916_s12 + $0x10c] sm:$0xf0]  ;;  %v2006_v63 = vld [vmem:[%s2916_s12 + $0xf8] sm:$0xf] }
  0xe0   :  { %712 = vmatmul.bf16.vlgmr.msrb.gmra.mxu3 %v635_v3  ;;  %v2039_v3 = vor.u32 %v2226_v1, %v2038_v0  ;;  %v1906_v0 = vld [vmem:[%s2916_s12 + $0x40] sm:$0xf]  ;;  %v2192_v1 = vld [vmem:[%s2916_s12 + $0x58] sm:$0xf0] }
  0xe1   :  { %1014 = vmatpush.bf16.msra.mxu3 %v2173_v54  ;;  %v1907_v10 = vor.u32 %v2192_v1, %v1906_v0  ;;  %v2215_v0 = vld [vmem:[%s2916_s12 + $0x110] sm:$0xf0] }
  0xe2   :  { %1392 = vmatpush.bf16.msrb.mxu2 %v2039_v3  ;;  %1405 = vmatpush.bf16.msrb.mxu0 %v2043_v7  ;;  %v1899_v3 = vor.u32 %v2191_v56, %v1898_v55  ;;  %v1967_v7 = vor.u32 %v2203_v61, %v1964_v62  ;;  %v1880_v55 = vld [vmem:[%s2916_s12 + $0x24] sm:$0xf0]  ;;  %v1998_v56 = vld [vmem:[%s2916_s12 + $0xf0] sm:$0xf]  ;;  %v2007_v1 = vor.u32 %v2215_v0, %v2006_v63 }
  0xe3   :  { %1418 = vmatpush.bf16.msrb.mxu1 %v2047_v8 }
  0xe6   :  { %1393 = vmatpush.bf16.msrb.mxu2 %v2011_v15  ;;  %1406 = vmatpush.bf16.msrb.mxu0 %v2015_v18  ;;  %v2185_v15 = vld [vmem:[%s2916_s12 + $0x20] sm:$0xf0]  ;;  %v2235_v18 = vld [vmem:[%s2916_s12 + $0x1b0] sm:$0xf0] }
  0xea   :  { %1394 = vmatpush.bf16.msrb.mxu2 %v1983_v28  ;;  %v2083_v28 = vor.u32 %v2235_v18, %v2082_v16  ;;  %v1950_v16 = vld [vmem:[%s2916_s12 + $0x88] sm:$0xf] }
 0x163   :  { %v713_v20 = vpop.f32.mrf.mxu3 }
 0x164   :  { %v714_v21 = vadd.f32 %v2247_v19, %v713_v20  ;;  %v2019_v19 = vor.u32 %v2220_v14, %v2018_v13  ;;  %v2209_v20 = vld [vmem:[%s2916_s12 + $0xe4] sm:$0xf]  ;;  %v1936_v13 = vld [vmem:[%s2916_s12 + $0x94] sm:$0xf0]  ;;  %v1878_v14 = vld [vmem:[%s2916_s12 + $0x8] sm:$0xf] }
 0x166   :  { %v717_v22 = vmul.f32 0.01, %v714_v21  ;;  %1419 = vmatpush.bf16.msrb.mxu1 %v2019_v19  ;;  %v2232_v19 = vld [vmem:[%s2916_s12 + $0x19c] sm:$0xf] }
 0x168   :  { %v718_v23 = vmax.f32 %v714_v21, %v717_v22  ;;  %v2231_v21 = vld [vmem:[%s2916_s12 + $0x194] sm:$0xf]  ;;  %v2076_v22 = vld [vmem:[%s2916_s12 + $0x1ac] sm:$0xf0] }
 0x169   :  { %v2079_v26 = vor.u32 %v2231_v21, %v2076_v22  ;;  %v2084_v21 = vld [vmem:[%s2916_s12 + $0x1b4] sm:$0xf0]  ;;  %v2090_v22 = vld [vmem:[%s2916_s12 + $0x1a0] sm:$0xf] }
 0x16a   :  { %v719_v24 = vpack.c.bf16 %v718_v23, %v718_v23  ;;  %v1984_v23 = vld [vmem:[%s2916_s12 + $0xfc] sm:$0xf0] }
 0x16b   :  { %v715_v25 = vpop.f32.mrf.mxu3  ;;  %1430 = vmatpush.bf16.msrb.mxu3 %v2079_v26  ;;  %v1987_v32 = vor.u32 %v2209_v20, %v1984_v23  ;;  %v1871_v20 = vor.u32 %v2184_v5, %v1870_v4  ;;  %v2236_v23 = vld [vmem:[%s2916_s12 + $0x1b8] sm:$0xf0]  ;;  %v1875_v26 = vor.u32 %v2181_v6, %v1872_v11  ;;  %v1972_v6 = vld [vmem:[%s2916_s12 + $0xd4] sm:$0xf0]  ;;  %v1942_v11 = vld [vmem:[%s2916_s12 + $0x80] sm:$0xf] }
 0x16c   :  { %830 = vmatmul.bf16.vlgmr.msra.gmra.mxu2 %v719_v24  ;;  %843 = vmatmul.bf16.vlgmr.msra.gmra.mxu0 %v719_v24  ;;  %v1990_v24 = vld [vmem:[%s2916_s12 + $0xe8] sm:$0xf]  ;;  %v2213_v25 = vld [vmem:[%s2916_s12 + $0x100] sm:$0xf0]  ;;  %v2204_v4 = vld [vmem:[%s2916_s12 + $0xbc] sm:$0xf] }
 0x16d   :  { %v1991_v33 = vor.u32 %v2213_v25, %v1990_v24  ;;  %1407 = vmatpush.bf16.msrb.mxu0 %v1987_v32  ;;  %v1939_v24 = vor.u32 %v2196_v12, %v1936_v13  ;;  %v2054_v32 = vld [vmem:[%s2916_s12 + $0x160] sm:$0xf]  ;;  %v2200_v12 = vld [vmem:[%s2916_s12 + $0x98] sm:$0xf0]  ;;  %v2197_v13 = vld [vmem:[%s2916_s12 + $0x84] sm:$0xf] }
 0x16f   :  { %1420 = vmatpush.bf16.msrb.mxu1 %v1991_v33  ;;  %v2228_v33 = vld [vmem:[%s2916_s12 + $0x178] sm:$0xf0] }
 0x1e9   :  { %v844_v37 = vpop.f32.mrf.mxu0 }
 0x1ea   :  { %v845_v38 = vadd.f32 %v844_v37, %v739_v35  ;;  %v1956_v35 = vld [vmem:[%s2916_s12 + $0xc4] sm:$0xf0]  ;;  %v2051_v37 = vor.u32 %v2224_v27, %v2048_v31  ;;  %v1879_v27 = vor.u32 %v2185_v15, %v1878_v14  ;;  %v2091_v31 = vor.u32 %v2236_v23, %v2090_v22  ;;  %v1944_v15 = vld [vmem:[%s2916_s12 + $0x9c] sm:$0xf0]  ;;  %v2190_v22 = vld [vmem:[%s2916_s12 + $0x4c] sm:$0xf] }
 0x1eb   :  { %v1943_v14 = vor.u32 %v2200_v12, %v1942_v11  ;;  %v1947_v18 = vor.u32 %v2197_v13, %v1944_v15  ;;  %v1916_v23 = vld [vmem:[%s2916_s12 + $0x64] sm:$0xf0] }
 0x1ec   :  { %v849_v40 = vmul.f32 0.5, %v845_v38  ;;  %1499 = vst [vmem:[%s2919_s15 + $0x8] sm:$0xff] %v845_v38  ;;  %v2206_v38 = vld [vmem:[%s2916_s12 + $0xc8] sm:$0xf0]  ;;  %1431 = vmatpush.bf16.msrb.mxu3 %v2051_v37  ;;  %v2062_v37 = vld [vmem:[%s2916_s12 + $0x168] sm:$0xf] }
 0x1ee   :  { %v850_v42 = vmul.f32 1.442695, %v849_v40  ;;  %v2020_v40 = vld [vmem:[%s2916_s12 + $0x13c] sm:$0xf0] }
 0x1ef   :  { %v831_v43 = vpop.f32.mrf.mxu2  ;;  %v2023_v44 = vor.u32 %v2217_v39, %v2020_v40  ;;  %v2055_v39 = vor.u32 %v2228_v33, %v2054_v32  ;;  %v1888_v32 = vld [vmem:[%s2916_s12 + $0x2c] sm:$0xf0]  ;;  %v1894_v33 = vld [vmem:[%s2916_s12 + $0x18] sm:$0xf] }
 0x1f0   :  { %2250 = vpow2.f32 %v850_v42  ;;  %v832_v45 = vadd.f32 %v831_v43, %v738_v41  ;;  %v1955_v41 = vor.u32 %v2205_v30, %v1954_v29  ;;  %v1926_v42 = vld [vmem:[%s2916_s12 + $0x70] sm:$0xf]  ;;  %v2198_v43 = vld [vmem:[%s2916_s12 + $0x88] sm:$0xf0]  ;;  %v2087_v30 = vor.u32 %v2232_v19, %v2084_v21  ;;  %v2193_v21 = vld [vmem:[%s2916_s12 + $0x60] sm:$0xf0] }
 0x1f1   :  { %v846_v46 = vpop.f32.mrf.mxu0  ;;  %v1927_v54 = vor.u32 %v2198_v43, %v1926_v42  ;;  %1432 = vmatpush.bf16.msrb.mxu3 %v2023_v44  ;;  %v2189_v42 = vld [vmem:[%s2916_s12 + $0x44] sm:$0xf]  ;;  %v1908_v43 = vld [vmem:[%s2916_s12 + $0x5c] sm:$0xf0]  ;;  %v2026_v44 = vld [vmem:[%s2916_s12 + $0x128] sm:$0xf] }
 0x1f2   :  { %1498 = vst [vmem:[%s2919_s15] sm:$0xff] %v832_v45  ;;  %v1963_v46 = vor.u32 %v2206_v38, %v1962_v36  ;;  %1395 = vmatpush.bf16.msrb.mxu2 %v1955_v41  ;;  %v2056_v36 = vld [vmem:[%s2916_s12 + $0x17c] sm:$0xf0]  ;;  %v2229_v38 = vld [vmem:[%s2916_s12 + $0x180] sm:$0xf0] }
 0x1f3   :  { %v2063_v41 = vor.u32 %v2229_v38, %v2062_v37  ;;  %v2249_v38 = vld [vmem:[%s2915_s11] ss:$0 sm:$0xff] }
 0x1f4   :  { %1421 = vmatpush.bf16.msrb.mxu1 %v1963_v46  ;;  %v2221_v46 = vld [vmem:[%s2916_s12 + $0x140] sm:$0xf0] }
 0x1f6   :  { %v2251_v48 = vpop.eup %2250  ;;  %1396 = vmatpush.bf16.msrb.mxu2 %v1927_v54  ;;  %v2182_v54 = vld [vmem:[%s2916_s12 + $0xc] sm:$0xf] }
 0x1f7   :  { %v852_v49 = vmul.f32 %v2251_v48, %v848_v47  ;;  %v833_v50 = vpop.f32.mrf.mxu2  ;;  %v2195_v47 = vld [vmem:[%s2916_s12 + $0x74] sm:$0xf]  ;;  %v2210_v48 = vld [vmem:[%s2916_s12 + $0xec] sm:$0xf] }
 0x1f8   :  { %v1928_v50 = vld [vmem:[%s2916_s12 + $0x8c] sm:$0xf0] }
 0x1f9   :  { %v853_v51 = vadd.f32 %v852_v49, %v832_v45  ;;  %v1959_v45 = vor.u32 %v2202_v34, %v1956_v35  ;;  %v1992_v49 = vld [vmem:[%s2916_s12 + $0x104] sm:$0xf0]  ;;  %v1931_v58 = vor.u32 %v2195_v47, %v1928_v50  ;;  %v2225_v34 = vld [vmem:[%s2916_s12 + $0x164] sm:$0xf]  ;;  %v2218_v47 = vld [vmem:[%s2916_s12 + $0x12c] sm:$0xf] }
 0x1fa   :  { %v1995_v57 = vor.u32 %v2210_v48, %v1992_v49  ;;  %1397 = vmatpush.bf16.msrb.mxu2 %v1899_v3  ;;  %v2059_v40 = vor.u32 %v2225_v34, %v2056_v36  ;;  %v2028_v48 = vld [vmem:[%s2916_s12 + $0x144] sm:$0xf0]  ;;  %v2027_v49 = vor.u32 %v2221_v46, %v2026_v44  ;;  %v2207_v3 = vld [vmem:[%s2916_s12 + $0xd0] sm:$0xf0] }
 0x1fb   :  { %v854_v52 = vpack.c.bf16 %v853_v51, %v853_v51  ;;  %v1934_v51 = vld [vmem:[%s2916_s12 + $0x78] sm:$0xf]  ;;  %1408 = vmatpush.bf16.msrb.mxu0 %v1959_v45  ;;  %v1911_v45 = vor.u32 %v2189_v42, %v1908_v43  ;;  %v2031_v50 = vor.u32 %v2218_v47, %v2028_v48  ;;  %v2187_v34 = vld [vmem:[%s2916_s12 + $0x30] sm:$0xf0] }
 0x1fc   :  { %1433 = vmatpush.bf16.msrb.mxu3 %v1995_v57  ;;  %v1883_v57 = vor.u32 %v2182_v54, %v1880_v55  ;;  %v1895_v37 = vor.u32 %v2187_v34, %v1894_v33 }
 0x1fd   :  { %931 = vmatmul.bf16.vlgmr.msra.gmra.mxu1 %v854_v52  ;;  %v2199_v52 = vld [vmem:[%s2916_s12 + $0x90] sm:$0xf0] }
 0x1fe   :  { %v1935_v59 = vor.u32 %v2199_v52, %v1934_v51  ;;  %1398 = vmatpush.bf16.msrb.mxu2 %v1871_v20  ;;  %v2034_v51 = vld [vmem:[%s2916_s12 + $0x130] sm:$0xf]  ;;  %v2222_v52 = vld [vmem:[%s2916_s12 + $0x148] sm:$0xf0]  ;;  %v1914_v20 = vld [vmem:[%s2916_s12 + $0x48] sm:$0xf] }
 0x1ff   :  { %1409 = vmatpush.bf16.msrb.mxu0 %v1931_v58  ;;  %v2214_v58 = vld [vmem:[%s2916_s12 + $0x108] sm:$0xf0] }
 0x200   :  { %1422 = vmatpush.bf16.msrb.mxu1 %v1935_v59  ;;  %1434 = vmatpush.bf16.msrb.mxu3 %v1967_v7  ;;  %v2211_v59 = vld [vmem:[%s2916_s12 + $0xf4] sm:$0xf]  ;;  %v1999_v61 = vor.u32 %v2214_v58, %v1998_v56  ;;  %v1978_v7 = vld [vmem:[%s2916_s12 + $0xc0] sm:$0xf] }
 0x201   :  { %v2003_v62 = vor.u32 %v2211_v59, %v2000_v60 }
 0x202   :  { %1443 = vmatpush.bf16.msra.mxu2 %v2083_v28 }
 0x203   :  { %1410 = vmatpush.bf16.msrb.mxu0 %v1903_v9  ;;  %v1975_v9 = vor.u32 %v2204_v4, %v1972_v6 }
 0x204   :  { %1423 = vmatpush.bf16.msrb.mxu1 %v1907_v10  ;;  %1435 = vmatpush.bf16.msrb.mxu3 %v1939_v24  ;;  %v1922_v24 = vld [vmem:[%s2916_s12 + $0x50] sm:$0xf] }
 0x206   :  { %1444 = vmatpush.bf16.msra.mxu2 %v2055_v39 }
 0x207   :  { %1411 = vmatpush.bf16.msrb.mxu0 %v1875_v26  ;;  %v1915_v26 = vor.u32 %v2193_v21, %v1914_v20 }
 0x208   :  { %1424 = vmatpush.bf16.msrb.mxu1 %v1879_v27  ;;  %1436 = vmatpush.bf16.msrb.mxu3 %v1911_v45  ;;  %v1919_v27 = vor.u32 %v2190_v22, %v1916_v23  ;;  %v1087_v45 = vld [vmem:[%s2917_s13] sm:$0x7f] }
 0x209   :  { %v1090_v46 = vperm.slane %v1087_v45, 1  ;;  %v1091_v48 = vperm.slane %v1087_v45, 2  ;;  %v1095_v63 = vperm.slane %v1087_v45, 6  ;;  %v1094_v4 = vperm.slane %v1087_v45, 5 }
 0x20a   :  { %1445 = vmatpush.bf16.msra.mxu2 %v2027_v49 }
 0x20b   :  { %1456 = vmatpush.bf16.msra.mxu0 %v2087_v30  ;;  %v2186_v30 = vld [vmem:[%s2916_s12 + $0x28] sm:$0xf0] }
 0x20c   :  { %1469 = vmatpush.bf16.msra.mxu1 %v2091_v31  ;;  %1437 = vmatpush.bf16.msrb.mxu3 %v1883_v57  ;;  %v2183_v31 = vld [vmem:[%s2916_s12 + $0x14] sm:$0xf] }
 0x20d   :  { %v1891_v36 = vor.u32 %v2183_v31, %v1888_v32 }
 0x20e   :  { %1446 = vmatpush.bf16.msra.mxu2 %v1999_v61 }
 0x20f   :  { %1457 = vmatpush.bf16.msra.mxu0 %v2059_v40 }
 0x210   :  { %1470 = vmatpush.bf16.msra.mxu1 %v2063_v41 }
 0x213   :  { %1458 = vmatpush.bf16.msra.mxu0 %v2031_v50 }
 0x217   :  { %1459 = vmatpush.bf16.msra.mxu0 %v2003_v62 }
 0x21b   :  { %1460 = vmatpush.bf16.msra.mxu0 %v1975_v9  ;;  %v1093_v9 = vperm.slane %v1087_v45, 4 }
 0x21f   :  { %1461 = vmatpush.bf16.msra.mxu0 %v1947_v18 }
 0x223   :  { %1462 = vmatpush.bf16.msra.mxu0 %v1919_v27 }
 0x227   :  { %1463 = vmatpush.bf16.msra.mxu0 %v1891_v36 }
 0x27a   :  { %v932_v2 = vpop.f32.mrf.mxu1 }
 0x27b   :  { %v933_v8 = vadd.f32 %v2248_v53, %v932_v2  ;;  %v2035_v53 = vor.u32 %v2222_v52, %v2034_v51  ;;  %v1970_v2 = vld [vmem:[%s2916_s12 + $0xb8] sm:$0xf]  ;;  %v1089_v51 = vperm.slane %v1087_v45, 0 }
 0x27c   :  { %v1971_v5 = vor.u32 %v2207_v3, %v1970_v2 }
 0x27d   :  { %v936_v17 = vmul.f32 0.01, %v933_v8  ;;  %1471 = vmatpush.bf16.msra.mxu1 %v2035_v53  ;;  %v1092_v53 = vperm.slane %v1087_v45, 3 }
 0x27e   :  { %1447 = vmatpush.bf16.msra.mxu2 %v1971_v5 }
 0x27f   :  { %v937_v25 = vmax.f32 %v933_v8, %v936_v17  ;;  %v2208_v8 = vld [vmem:[%s2916_s12 + $0xd8] sm:$0xf0]  ;;  %v2201_v17 = vld [vmem:[%s2916_s12 + $0xa0] sm:$0xf0] }
 0x280   :  { %v1979_v10 = vor.u32 %v2208_v8, %v1978_v7  ;;  %v1951_v19 = vor.u32 %v2201_v17, %v1950_v16 }
 0x281   :  { %v938_v29 = vpack.c.bf16 %v937_v25, %v937_v25  ;;  %1472 = vmatpush.bf16.msra.mxu1 %v2007_v1  ;;  %v2194_v25 = vld [vmem:[%s2916_s12 + $0x68] sm:$0xf0] }
 0x282   :  { %v934_v35 = vpop.f32.mrf.mxu1  ;;  %1448 = vmatpush.bf16.msra.mxu2 %v1943_v14  ;;  %v1923_v28 = vor.u32 %v2194_v25, %v1922_v24 }
 0x283   :  { %1015 = vmatmul.bf16.vlgmr.msra.gmra.mxu3 %v938_v29  ;;  %v1886_v29 = vld [vmem:[%s2916_s12 + $0x10] sm:$0xf] }
 0x284   :  { %v1887_v35 = vor.u32 %v2186_v30, %v1886_v29 }
 0x285   :  { %1473 = vmatpush.bf16.msra.mxu1 %v1979_v10 }
 0x286   :  { %1449 = vmatpush.bf16.msra.mxu2 %v1915_v26 }
 0x289   :  { %1474 = vmatpush.bf16.msra.mxu1 %v1951_v19 }
 0x28a   :  { %1450 = vmatpush.bf16.msra.mxu2 %v1887_v35 }
 0x28d   :  { %1475 = vmatpush.bf16.msra.mxu1 %v1923_v28 }
 0x291   :  { %1476 = vmatpush.bf16.msra.mxu1 %v1895_v37 }
 0x306   :  { %v1016_v39 = vpop.f32.mrf.mxu3 }
 0x307   :  { %v1017_v40 = vadd.f32 %v2249_v38, %v1016_v39 }
 0x309   :  { %v1020_v41 = vmul.f32 0.01, %v1017_v40 }
 0x30b   :  { %v1021_v42 = vmax.f32 %v1017_v40, %v1020_v41 }
 0x30d   :  { %v1022_v43 = vpack.c.bf16 %v1021_v42, %v1021_v42 }
 0x30e   :  { %v1018_v44 = vpop.f32.mrf.mxu3 }
 0x30f   :  { %1399 = vmatmul.bf16.vlgmr.msrb.gmra.mxu2 %v1022_v43  ;;  %1412 = vmatmul.bf16.vlgmr.msrb.gmra.mxu0 %v1022_v43 }
 0x310   :  { %1425 = vmatmul.bf16.vlgmr.msrb.gmra.mxu1 %v1022_v43  ;;  %1438 = vmatmul.bf16.vlgmr.msrb.gmra.mxu3 %v1022_v43 }
 0x31f   :  { %1451 = vmatmul.bf16.vlgmr.msra.gmra.mxu2 %v1022_v43  ;;  %1464 = vmatmul.bf16.vlgmr.msra.gmra.mxu0 %v1022_v43 }
 0x320   :  { %1477 = vmatmul.bf16.vlgmr.msra.gmra.mxu1 %v1022_v43 }
 0x38c   :  { %v1413_v47 = vpop.f32.mrf.mxu0 }
 0x38d   :  { %v1426_v49 = vpop.f32.mrf.mxu1  ;;  %v1414_v50 = vadd.f32 %v1413_v47, %v1090_v46 }
 0x38e   :  { %v1427_v52 = vadd.f32 %v1426_v49, %v1091_v48 }
 0x38f   :  { %2252 = vtanh.f32 %v1414_v50 }
 0x390   :  { %2254 = vtanh.f32 %v1427_v52 }
 0x392   :  { %v1400_v54 = vpop.f32.mrf.mxu2 }
 0x393   :  { %v1401_v55 = vadd.f32 %v1400_v54, %v1089_v51  ;;  %v1439_v56 = vpop.f32.mrf.mxu3 }
 0x394   :  { %v1440_v57 = vadd.f32 %v1439_v56, %v1092_v53  ;;  %v1415_v58 = vpop.f32.mrf.mxu0 }
 0x395   :  { %2256 = vtanh.f32 %v1401_v55  ;;  %v1428_v59 = vpop.f32.mrf.mxu1  ;;  %v2253_v60 = vpop.eup %2252 }
 0x396   :  { %2258 = vtanh.f32 %v1440_v57  ;;  %v2255_v61 = vpop.eup %2254 }
 0x39a   :  { %v1402_v62 = vpop.f32.mrf.mxu2 }
 0x39b   :  { %v2257_v0 = vpop.eup %2256  ;;  %v1441_v1 = vpop.f32.mrf.mxu3 }
 0x39c   :  { %v2259_v2 = vpop.eup %2258  ;;  %v1489_v3 = vpack.c.bf16 %v2253_v60, %v2257_v0  ;;  %v1465_v5 = vpop.f32.mrf.mxu0 }
 0x39d   :  { %v1490_v6 = vpack.c.bf16 %v2259_v2, %v2255_v61  ;;  %v1478_v7 = vpop.f32.mrf.mxu1  ;;  %v1466_v10 = vadd.f32 %v1465_v5, %v1094_v4 }
 0x39e   :  { %1493 = vst [vmem:[%s2918_s14] sm:$0xff] %v1489_v3  ;;  %v1479_v8 = vadd.f32 %v1478_v7, %v1095_v63 }
 0x39f   :  { %1494 = vst [vmem:[%s2918_s14 + $0x8] sm:$0xff] %v1490_v6 }
 0x3a0   :  { %2260 = vtanh.f32 %v1479_v8 }
 0x3a1   :  { %2262 = vtanh.f32 %v1466_v10 }
 0x3a2   :  { %v1452_v11 = vpop.f32.mrf.mxu2 }
 0x3a3   :  { %v1453_v12 = vadd.f32 %v1452_v11, %v1093_v9 }
 0x3a4   :  { %v1467_v13 = vpop.f32.mrf.mxu0 }
 0x3a5   :  { %2264 = vtanh.f32 %v1453_v12  ;;  %v1480_v14 = vpop.f32.mrf.mxu1 }
 0x3a6   :  { %v2261_v15 = vpop.eup %2260 }
 0x3a7   :  { %v1492_v16 = vpack.c.bf16 %v2261_v15, %v2261_v15  ;;  %v2263_v17 = vpop.eup %2262 }
 0x3a9   :  { %1497 = vst.msk [vmem:[%s2918_s14 + $0x18] sm:$0xf] %vm1496_vm1, %v1492_v16 }
 0x3aa   :  { %v1454_v18 = vpop.f32.mrf.mxu2 }
 0x3ab   :  { %v2265_v19 = vpop.eup %2264 }
 0x3ac   :  { %v1491_v20 = vpack.c.bf16 %v2263_v17, %v2265_v19 }
 0x3ae   :  { %1495 = vst [vmem:[%s2918_s14 + $0x10] sm:$0xff] %v1491_v20 }
 0x3af   :  { %1508 = vsyncpa [#allocation3], 1 }
 0x3b0   :  { %1509 = vsyncpa [#allocation5], 1 }
 0x3b1   :  { %1510 = vsyncpa [#allocation8], 1 }

</bundles_post_ra>
